<compile_context>
chip_gen: v7x
topology: tpu7x:2x2x1
jax: 0.10.0
libtpu: 0.0.40
codegen_flags: <defaults>
</compile_context>

<pallas_src>
import jax
import jax.numpy as jnp
from jax import lax
from jax.experimental import pallas as pl
from jax.experimental.pallas import tpu as pltpu


def _rel_pos_bias_kernel(index_ref, table_ref, out_ref):
    # index_ref: (1, TL)  int32      -- tile of the flattened (padded) index
    # table_ref: (H, R)   bf16/f32   -- full transposed bias table (lane-dense)
    # out_ref:   (H, TL)  out_dtype  -- bias tile, heads-major (lane-dense)
    R = table_ref.shape[1]
    TL = index_ref.shape[1]

    idx = index_ref[0, :]                                          # (TL,)
    row_iota = lax.broadcasted_iota(jnp.int32, (R, TL), 0)         # rows = table entries
    one_hot = (row_iota == idx[None, :]).astype(table_ref.dtype)   # (R, TL)

    # (H, TL) = table (H, R) @ one_hot (R, TL), contract over R.
    # Exactly one nonzero per output column -> exact gather under f32 accum.
    # NOTE: an index >= R would produce an all-zero column (silent 0.0 bias);
    # indices from make_relative_position_index are always in range.
    out_ref[...] = lax.dot_general(
        table_ref[...],
        one_hot,
        dimension_numbers=(((1,), (0,)), ((), ())),
        preferred_element_type=jnp.float32,
    ).astype(out_ref.dtype)


def make_relative_position_index(window_size):
    """Pure-JAX replication of the PyTorch __init__ buffer computation."""
    wh, ww = window_size
    ch, cw = jnp.meshgrid(jnp.arange(wh), jnp.arange(ww), indexing="ij")
    coords = jnp.stack([ch, cw])                                   # (2, Wh, Ww)
    coords_flatten = coords.reshape(2, -1)                         # (2, Wh*Ww)
    rel = coords_flatten[:, :, None] - coords_flatten[:, None, :]  # (2, L, L)
    rel = jnp.transpose(rel, (1, 2, 0))                            # (L, L, 2)
    rel = rel.at[:, :, 0].add(wh - 1)
    rel = rel.at[:, :, 1].add(ww - 1)
    rel = rel.at[:, :, 0].multiply(2 * ww - 1)
    return rel.sum(-1).astype(jnp.int32)                           # (L, L)


def _round_up(x, m):
    return ((x + m - 1) // m) * m


def _choose_tiling(LL, max_tile):
    """Return (TL, n_tiles): TL a multiple of 128, n_tiles*TL >= LL.

    Single tile only when the whole (padded) extent is tiny; otherwise an EVEN
    number of near-equal tiles so v7x's two TensorCores get balanced work.
    """
    LL128 = _round_up(LL, 128)
    if LL128 <= 256:
        return LL128, 1
    n = 2
    while True:
        TL = _round_up(-(-LL // n), 128)
        if TL <= max_tile:
            return TL, n
        n += 2


def relative_position_bias_forward(table, relative_position_index, window_size,
                                   *, compute_dtype=jnp.bfloat16,
                                   out_dtype=jnp.float32, max_tile=8192):
    """table: (num_relative_distance, num_heads) f32
       relative_position_index: (L, L) int
       returns: (num_heads, L, L) out_dtype  (== PyTorch forward output)
    """
    wh, ww = window_size
    L = wh * ww
    LL = L * L
    R, H = table.shape

    TL, n_tiles = _choose_tiling(LL, max_tile)
    LL_pad = TL * n_tiles

    # Flatten + pad the index (pad value 0 is a valid row -> no garbage lanes).
    index_flat = relative_position_index.reshape(-1).astype(jnp.int32)
    if LL_pad > LL:
        index_flat = jnp.pad(index_flat, (0, LL_pad - LL))
    index_flat = index_flat.reshape(1, LL_pad)

    # Pre-transpose table to (H, R): lane-dense MXU stationary operand.
    table_hr = table.T.astype(compute_dtype)

    itemsize = jnp.dtype(compute_dtype).itemsize
    out_itemsize = jnp.dtype(out_dtype).itemsize

    # Explicit VMEM budget: one-hot intermediate + double-buffered index / out /
    # table tiles, 2x headroom, capped at 48 MiB (safe even on v7x's 64 MiB).
    est = (R * TL * itemsize
           + 2 * (TL * 4 + H * TL * out_itemsize + H * R * itemsize))
    vmem_limit = int(min(max(2 * est, 16 * 1024 * 1024), 48 * 1024 * 1024))

    cost = pl.CostEstimate(
        flops=2 * H * R * LL_pad,
        transcendentals=0,
        bytes_accessed=LL_pad * 4 + R * H * itemsize + H * LL_pad * out_itemsize,
    )

    out = pl.pallas_call(
        _rel_pos_bias_kernel,
        out_shape=jax.ShapeDtypeStruct((H, LL_pad), out_dtype),
        grid_spec=pltpu.PrefetchScalarGridSpec(
            num_scalar_prefetch=0,
            grid=(n_tiles,),
            in_specs=[
                pl.BlockSpec((1, TL), lambda i: (0, i)),   # index tile
                pl.BlockSpec((H, R), lambda i: (0, 0)),    # whole (tiny) table
            ],
            out_specs=pl.BlockSpec((H, TL), lambda i: (0, i)),
        ),
        compiler_params=pltpu.CompilerParams(
            dimension_semantics=("parallel",),   # shard tiles across v7x's 2 TCs
            vmem_limit_bytes=vmem_limit,
        ),
        cost_estimate=cost,
    )(index_flat, table_hr)

    return out[:, :LL].reshape(H, L, L)


def _reference(table, rel_pos_index, num_heads, L):
    ref = table[rel_pos_index.reshape(-1)].reshape(L, L, num_heads)
    return jnp.transpose(ref, (2, 0, 1))


def _check(window_size, num_heads, key):
    wh, ww = window_size
    L = wh * ww
    R = (2 * wh - 1) * (2 * ww - 1) + 3
    table = 0.02 * jax.random.truncated_normal(
        key, -2.0, 2.0, (R, num_heads), dtype=jnp.float32)
    rel_pos_index = make_relative_position_index(window_size)

    out = relative_position_bias_forward(table, rel_pos_index, window_size)
    out = jax.block_until_ready(out)
    assert out.shape == (num_heads, L, L), out.shape

    # The gather is exact; only the table rounds to bf16 inside the kernel.
    table_bf16 = table.astype(jnp.bfloat16).astype(jnp.float32)
    ref_exact = _reference(table_bf16, rel_pos_index, num_heads, L)
    assert jnp.allclose(out, ref_exact, atol=1e-6), "mismatch vs bf16-exact reference"

    ref_f32 = _reference(table, rel_pos_index, num_heads, L)
    assert jnp.allclose(out, ref_f32, atol=1e-3, rtol=1e-2), "mismatch vs f32 reference"


if __name__ == "__main__":
    key = jax.random.PRNGKey(0)
    k0, k1 = jax.random.split(key)

    # Small module-consistent shapes: 4x4 window, 8 heads -> single 256-lane tile.
    _check(window_size=(4, 4), num_heads=8, key=k0)

    # Swin-style 7x7 window: L*L = 2401 -> 2 balanced tiles of 1280 (padded),
    # exercising the even-tile-count + padding path.
    _check(window_size=(7, 7), num_heads=8, key=k1)

    print("KERNEL_OK")
</pallas_src>

<mosaic_0001>
module attributes {stable_mosaic.version = 11 : i64} {
  func.func @_rel_pos_bias_kernel(%arg0: i32, %arg1: memref<1x256xi32, #tpu.memory_space<vmem>>, %arg2: memref<8x52xbf16, #tpu.memory_space<vmem>>, %arg3: memref<8x256xf32, #tpu.memory_space<vmem>>) attributes {dimension_semantics = [#tpu.dimension_semantics<parallel>], iteration_bounds = array<i64: 1>, scalar_prefetch = 0 : i64, scratch_operands = 0 : i64, tpu.core_type = #tpu.core_type<tc>, window_params = [{transform_indices = @transform_0, window_bounds = array<i64: 1, 256>}, {pipeline_mode = #tpu.pipeline_mode<synchronous>, transform_indices = @transform_1, window_bounds = array<i64: 8, 52>}, {transform_indices = @transform_2, window_bounds = array<i64: 8, 256>}]} {
    %c0 = arith.constant 0 : index
    %c0_0 = arith.constant 0 : index
    %0 = vector.load %arg1[%c0, %c0_0] : memref<1x256xi32, #tpu.memory_space<vmem>>, vector<1x256xi32>
    %1 = vector.shape_cast %0 : vector<1x256xi32> to vector<256xi32>
    %2 = tpu.iota {dimensions = array<i32: 0>} : vector<52x256xi32>
    %3 = vector.shape_cast %1 : vector<256xi32> to vector<1x256xi32>
    %4 = vector.broadcast %3 : vector<1x256xi32> to vector<52x256xi32>
    %5 = arith.cmpi eq, %2, %4 : vector<52x256xi32>
    %6 = arith.extui %5 : vector<52x256xi1> to vector<52x256xi32>
    %7 = arith.sitofp %6 : vector<52x256xi32> to vector<52x256xf32>
    %8 = arith.truncf %7 : vector<52x256xf32> to vector<52x256xbf16>
    %c0_1 = arith.constant 0 : index
    %c0_2 = arith.constant 0 : index
    %9 = vector.load %arg2[%c0_1, %c0_2] : memref<8x52xbf16, #tpu.memory_space<vmem>>, vector<8x52xbf16>
    %cst = arith.constant dense<0.000000e+00> : vector<8x256xf32>
    %10 = tpu.matmul %9, %8, %cst {dimension_numbers = #tpu.dot_dimension_numbers<[1], [0], [0], [1], [0, 0, 1, 1], [], []>} : vector<8x52xbf16>, vector<52x256xbf16>, vector<8x256xf32> -> vector<8x256xf32>
    %c0_3 = arith.constant 0 : index
    %c0_4 = arith.constant 0 : index
    %11 = vector.load %arg3[%c0_3, %c0_4] : memref<8x256xf32, #tpu.memory_space<vmem>>, vector<8x256xf32>
    tpu.vector_store %arg3[%c0_3, %c0_4], %10 {strides = array<i32>} : memref<8x256xf32, #tpu.memory_space<vmem>>, vector<8x256xf32>,
    return
  }
  func.func @transform_0(%arg0: i32) -> (i32, i32) {
    %c0_i32 = arith.constant 0 : i32
    %c0_i32_0 = arith.constant 0 : i32
    return %c0_i32, %arg0 : i32, i32
  }
  func.func @transform_1(%arg0: i32) -> (i32, i32) {
    %c0_i32 = arith.constant 0 : i32
    %c0_i32_0 = arith.constant 0 : i32
    %c0_i32_1 = arith.constant 0 : i32
    return %c0_i32, %c0_i32_0 : i32, i32
  }
  func.func @transform_2(%arg0: i32) -> (i32, i32) {
    %c0_i32 = arith.constant 0 : i32
    %c0_i32_0 = arith.constant 0 : i32
    return %c0_i32, %arg0 : i32, i32
  }
}

</mosaic_0001>

<bundles_post_ra>
// kernel: tpu_custom_call.1
= control target key start
LH: loop header
LB: loop body
LE: loop exit
PB: predicated region body
PF: predicated region fallthrough
CT: control target
= control target key end

     0   :  { %7 = vsyncpa [#allocation3], 0  ;;  %s338_s0 = inlined_call_operand.hbm [shape: s32[1,256], index: 0, kind: input, shape index: {}]   ;;  %s339_s1 = inlined_call_operand.hbm [shape: bf16[8,52], index: 1, kind: input, shape index: {}]   ;;  %s340_s2 = inlined_call_operand.hbm [shape: f32[8,256], index: 2, kind: output, shape index: {}]  }
   0x1   :  { %8 = vsyncpa [#allocation6], 0 }
   0x2   :  { %9 = vsyncpa [#allocation4], 0  ;;  %s281_s9 = smov [#allocation2]   ;;  %s282_s11 = smov [#allocation5]  }
   0x3   :  { %s16_s10 = sshll.u32 %s281_s9, 4  ;;  %s26_s12 = sshll.u32 %s282_s11, 4  ;;  %s17_s10 = int_to_ptr.vmem [resolvable:$true] %s16_s10  ;;  %s27_s12 = int_to_ptr.vmem [resolvable:$true] %s26_s12 }
   0x4   :  { %s209_s15 = scalar_lea.hbm %s338_s0, 32 }
   0x5   :  { %p210_p0 = scmp.ne.s32.totalorder %s338_s0, %s209_s15  ;;  %p213_p1 = scmp.lt.u32.totalorder %s209_s15, %s338_s0 }
   0x7   :  { %p215_p2 = pnand %p213_p1, %p210_p0 }
   0x9   :  { %218 = shalt.err (!%p215_p2)
}
   0xa   :  { %s219_s20 = scalar_lea.vmem %s17_s10, 32  ;;  %p224_p4 = scmp.lt.s32.totalorder %s17_s10, %s17_s10 }
   0xb   :  { %p220_p3 = scmp.ne.s32.totalorder %s17_s10, %s219_s20  ;;  %p225_p5 = scmp.lt.s32.totalorder %s219_s20, %s219_s20 }
   0xd   :  { %p226_p6 = por %p225_p5, %p224_p4 }
   0xf   :  { %p227_p7 = pnand %p226_p6, %p220_p3 }
  0x11   :  { %230 = shalt.err (!%p227_p7)
}
  0x12   :  { %19 = dma.hbm_to_vmem [thread:$0]  %s338_s0, 32, %s17_s10, [#allocation3]  }
  0x13   :  { %s231_s25 = scalar_lea.hbm %s339_s1, 64 }
  0x14   :  { %p232_p8 = scmp.ne.s32.totalorder %s339_s1, %s231_s25  ;;  %p235_p9 = scmp.lt.u32.totalorder %s231_s25, %s339_s1 }
  0x16   :  { %p237_p10 = pnand %p235_p9, %p232_p8 }
  0x18   :  { %240 = shalt.err (!%p237_p10)
}
  0x19   :  { %s241_s30 = scalar_lea.vmem %s27_s12, 64  ;;  %p246_p12 = scmp.lt.s32.totalorder %s27_s12, %s27_s12 }
  0x1a   :  { %p242_p11 = scmp.ne.s32.totalorder %s27_s12, %s241_s30  ;;  %p247_p13 = scmp.lt.s32.totalorder %s241_s30, %s241_s30 }
  0x1c   :  { %p248_p0 = por %p247_p13, %p246_p12 }
  0x1e   :  { %p249_p1 = pnand %p248_p0, %p242_p11 }
  0x20   :  { %252 = shalt.err (!%p249_p1)
}
  0x21   :  { %29 = dma.hbm_to_vmem [thread:$0]  %s339_s1, 64, %s27_s12, [#allocation6]  }
  0x22   :  { %275 = dma.done.wait [#allocation3], 32  }
  0x23   :  { %276 = vsyncadd [#allocation3], 4294967264 }
  0x24   :  { %277 = dma.done.wait [#allocation6], 64  }
  0x25   :  { %278 = vsyncadd [#allocation6], 4294967232  ;;  %v38_v0 = vlaneseq  ;;  %v283_v2 = vmov 0   ;;  %v37_v6 = vld [vmem:[#allocation2] sm:$0x3]  ;;  %v285_v15 = vmov 0.0  }
  0x26   :  { %148 = vmatprep.mubr.bf16.mxu0 %v283_v2  ;;  %v284_v14 = vmov 1.0|1.0   ;;  %v104_v21 = vld [vmem:[#allocation5] sm:$0xf]  ;;  %s286_s1 = smov [#allocation7]  }
  0x27   :  { %v39_v1 = vshrl.u32 %v38_v0, 7  ;;  %s165_s4 = sshll.u32 %s286_s1, 4  ;;  %s166_s4 = int_to_ptr.vmem [resolvable:$true] %s165_s4 }
  0x28   :  { %s253_s5 = scalar_lea.vmem %s166_s4, 256  ;;  %p258_p3 = scmp.lt.s32.totalorder %s166_s4, %s166_s4 }
  0x29   :  { %v52_v3 = vsub.s32 1, %v39_v1  ;;  %v48_v4 = vsub.s32 0, %v39_v1  ;;  %v40_v5 = vadd.s32 8, %v39_v1  ;;  %v41_v7 = vadd.s32 16, %v39_v1  ;;  %p254_p2 = scmp.ne.s32.totalorder %s166_s4, %s253_s5  ;;  %p259_p4 = scmp.lt.s32.totalorder %s253_s5, %s253_s5 }
  0x2a   :  { %v42_v8 = vadd.s32 24, %v39_v1  ;;  %v43_v11 = vadd.s32 32, %v39_v1  ;;  %v44_v12 = vadd.s32 40, %v39_v1  ;;  %v45_v13 = vadd.s32 48, %v39_v1 }
  0x2b   :  { %v53_v9 = vrot.slane %v37_v6, %v52_v3  ;;  %v49_v10 = vrot.slane %v37_v6, %v48_v4  ;;  %p260_p5 = por %p259_p4, %p258_p3 }
  0x2d   :  { %vm55_vm0 = vcmp.eq.s32.totalorder %v39_v1, %v53_v9  ;;  %vm57_vm1 = vcmp.eq.s32.totalorder %v40_v5, %v53_v9  ;;  %vm54_vm2 = vcmp.eq.s32.totalorder %v39_v1, %v49_v10  ;;  %vm56_vm3 = vcmp.eq.s32.totalorder %v40_v5, %v49_v10  ;;  %p261_p6 = pnand %p260_p5, %p254_p2 }
  0x2e   :  { %vm189_vm4 = vmpackc.low %vm57_vm1, %vm55_vm0  ;;  %vm59_vm5 = vcmp.eq.s32.totalorder %v41_v7, %v53_v9  ;;  %vm61_vm6 = vcmp.eq.s32.totalorder %v42_v8, %v53_v9  ;;  %vm58_vm7 = vcmp.eq.s32.totalorder %v41_v7, %v49_v10  ;;  %vm60_vm8 = vcmp.eq.s32.totalorder %v42_v8, %v49_v10 }
  0x2f   :  { %190 = vmatprep.subr.msk.bf16.mxu0 %vm189_vm4, %v284_v14  ;;  %vm191_vm9 = vmpackc.low %vm56_vm3, %vm54_vm2  ;;  %vm63_vm10 = vcmp.eq.s32.totalorder %v43_v11, %v53_v9  ;;  %vm65_vm11 = vcmp.eq.s32.totalorder %v44_v12, %v53_v9  ;;  %vm67_vm13 = vcmp.eq.s32.totalorder %v45_v13, %v53_v9  ;;  %vm66_vm14 = vcmp.eq.s32.totalorder %v45_v13, %v49_v10 }
  0x30   :  { %192 = vmatpush1.bf16.msk.msra.mxu0 %vm191_vm9, %v284_v14  ;;  %vm193_vm12 = vmpackc.low %vm61_vm6, %vm59_vm5  ;;  %vm62_vm1 = vcmp.eq.s32.totalorder %v43_v11, %v49_v10  ;;  %vm64_vm4 = vcmp.eq.s32.totalorder %v44_v12, %v49_v10  ;;  %v188_v16 = vsel %vm67_vm13, 1.0, %v285_v15  ;;  %v187_v17 = vsel %vm66_vm14, 1.0, %v285_v15 }
  0x31   :  { %194 = vmatprep.subr.msk.bf16.mxu0 %vm193_vm12, %v284_v14  ;;  %vm195_vm15 = vmpackc.low %vm60_vm8, %vm58_vm7  ;;  %v103_v18 = vpack.c.bf16 %v188_v16, %v188_v16  ;;  %v102_v19 = vpack.c.bf16 %v187_v17, %v187_v17  ;;  %vm109_vm3 = vcmask 1041408   ;;  %vm105_vm5 = vcmask 424960  }
  0x32   :  { %vm197_vm0 = vmpackc.low %vm65_vm11, %vm63_vm10 }
  0x33   :  { %vm199_vm2 = vmpackc.low %vm64_vm4, %vm62_vm1  ;;  %v111_v20 = vsel %vm109_vm3, %v102_v19, 0 }
  0x34   :  { %196 = vmatpush1.bf16.msk.msra.mxu0 %vm195_vm15, %v284_v14 }
  0x35   :  { %198 = vmatprep.subr.msk.bf16.mxu0 %vm197_vm0, %v284_v14 }
  0x38   :  { %200 = vmatpush1.bf16.msk.msra.mxu0 %vm199_vm2, %v284_v14 }
  0x39   :  { %201 = vmatprep.subr.msk.bf16.mxu0 %vm109_vm3, %v103_v18 }
  0x3c   :  { %123 = vmatpush1.bf16.msra.mxu0 %v111_v20 }
  0x3f   :  { %202 = vmatmul.mubr.msk.bf16.vlgmr.msra.gmra.mrb[0].mxu0 %vm105_vm5, %v104_v21 }
 0x112   :  { %v150_v22 = vpop.f32.mrb[0].mxu0 }
 0x113   :  { %157 = vst [vmem:[#allocation7] sm:$0xff] %v150_v22  ;;  %v152_v23 = vpop.f32.mrb[1].mxu0 }
 0x114   :  { %158 = vst [vmem:[#allocation7 + $0x8] sm:$0xff] %v152_v23  ;;  %v154_v24 = vpop.f32.mrb[2].mxu0 }
 0x115   :  { %v155_v25 = vpop.f32.mrb[3].mxu0 }
 0x116   :  { %264 = shalt.err (!%p261_p6)
}
 0x117   :  { %s265_s8 = scalar_lea.hbm %s340_s2, 256 }
 0x118   :  { %p266_p7 = scmp.ne.s32.totalorder %s340_s2, %s265_s8  ;;  %p269_p8 = scmp.lt.u32.totalorder %s265_s8, %s340_s2 }
 0x11a   :  { %p271_p9 = pnand %p269_p8, %p266_p7 }
 0x11c   :  { %274 = shalt.err (!%p271_p9)
}
 0x11d   :  { %168 = dma.vmem_to_hbm [thread:$0]  %s166_s4, 256, %s340_s2, [#allocation4]  }
 0x11e   :  { %279 = dma.done.wait [#allocation4], 256  }
 0x11f   :  { %280 = vsyncadd [#allocation4], 4294967040 }
 0x120   :  { %172 = vsyncpa [#allocation3], 1 }
 0x121   :  { %173 = vsyncpa [#allocation6], 1 }
 0x122   :  { %174 = vsyncpa [#allocation4], 1 }

</bundles_post_ra>
